<compile_context>
chip_gen: v7x
topology: tpu7x:2x2x1
jax: 0.10.0
libtpu: 0.0.40
codegen_flags: <defaults>
</compile_context>

<pallas_src>
import functools

import jax
import jax.numpy as jnp
from jax import lax
from jax.experimental import pallas as pl
from jax.experimental.pallas import tpu as pltpu


# ----------------------------- kernel --------------------------------------- #

def _norm_fused_kernel(x_ref, w_ref, p_ref, o_ref,
                       y_buf, ssum_ref, ssq_ref, scale_ref, shift_ref,
                       *, grid_hw, m_total, eps, cin):
    """Fused Conv1x1 + BatchNorm(train) + ReLU, lane-dense (channels on sublanes).

    Grid = (phase, sample, hw_tile).  Phase 0 computes the conv output tiles
    into `y_buf` (VMEM) and accumulates per-channel stats; phase 1 folds the
    stats into (scale, shift) once and writes the normalized/ReLU'd output.
    """
    phase = pl.program_id(0)
    s = pl.program_id(1)
    j = pl.program_id(2)
    t = s * grid_hw + j                      # flat tile index into y_buf

    @pl.when((phase == 0) & (t == 0))
    def _init_stats():
        ssum_ref[...] = jnp.zeros_like(ssum_ref)
        ssq_ref[...] = jnp.zeros_like(ssq_ref)

    @pl.when(phase == 0)
    def _conv_and_stats():
        x = x_ref[0]                         # (Cin, T)   spatial on lanes
        wt = w_ref[...]                      # (Cout, Cin)
        params = p_ref[...]                  # (Cout, 3): [bias, gamma, beta]
        # 1x1 conv as an explicit VPU MAC (Cin tiny & static; use jnp.dot/MXU
        # instead if Cin grows large).
        y = wt[:, 0:1] * x[0:1, :]           # (Cout,1)*(1,T) -> (Cout,T)
        for k in range(1, cin):
            y = y + wt[:, k:k + 1] * x[k:k + 1, :]
        y = y + params[:, 0:1]               # + conv bias (broadcast over lanes)
        y_buf[t] = y
        ssum_ref[...] += jnp.sum(y, axis=1, keepdims=True)       # (Cout,1)
        ssq_ref[...] += jnp.sum(y * y, axis=1, keepdims=True)    # (Cout,1)

    @pl.when((phase == 1) & (t == 0))
    def _finalize_stats():
        params = p_ref[...]
        inv_m = 1.0 / m_total
        mean = ssum_ref[...] * inv_m
        # Guard fp cancellation: E[y^2] - mean^2 can dip slightly below 0.
        var = jnp.maximum(ssq_ref[...] * inv_m - mean * mean, 0.0)
        inv = lax.rsqrt(var + eps)
        scale_ref[...] = params[:, 1:2] * inv                    # gamma * inv_std
        shift_ref[...] = params[:, 2:3] - mean * scale_ref[...]  # beta - mean*scale

    @pl.when(phase == 1)
    def _bn_relu():
        o_ref[0] = jnp.maximum(y_buf[t] * scale_ref[...] + shift_ref[...], 0.0)


# ----------------------------- wrapper -------------------------------------- #

def norm_training_forward(x_nchw, w, b, gamma, beta, *, eps=1e-5,
                          max_tile_hw=2048):
    """NormTraining.forward: split batch in 3, take the clean third, run model.

    x_nchw: (N, Cin, H, W) float32 (PyTorch layout)
    w:      (Cin, Cout)    1x1 conv weight (frozen)
    b:      (Cout,)        conv bias       (frozen)
    gamma:  (Cout,)        BN weight       (trainable)
    beta:   (Cout,)        BN bias         (trainable)
    returns (N//3, Cout, H, W) float32
    """
    batch = x_nchw.shape[0]
    clean = x_nchw[: batch // 3]             # torch.split(x, N // 3)[0]

    n, cin, h, wdim = clean.shape
    cout = w.shape[1]
    hw = h * wdim

    # Spatial (lane) tile: biggest multiple-of-128 divisor of hw up to the cap,
    # else the full spatial extent (full array dim is always legal).
    if hw % 128 == 0 and hw > max_tile_hw:
        tile_hw = max(tt for tt in range(128, max_tile_hw + 1, 128)
                      if hw % tt == 0)
    else:
        tile_hw = hw
    grid_hw = hw // tile_hw
    total_tiles = n * grid_hw
    m_total = float(n * hw)                  # BN reduces over N*H*W per channel

    # Pure reshapes, no transposes (stays in NCHW order).
    x3 = clean.reshape(n, cin, hw).astype(jnp.float32)            # (n, Cin, HW)
    wt = jnp.transpose(w.astype(jnp.float32))                     # (Cout, Cin) tiny
    params = jnp.stack([b, gamma, beta], axis=1).astype(jnp.float32)  # (Cout, 3)

    # Full conv output lives in a VMEM scratch between the two phases.
    y_buf_bytes = total_tiles * cout * tile_hw * 4
    assert y_buf_bytes <= 32 * 1024 * 1024, (
        "conv output must fit the VMEM scratch; see TODO for a streaming fallback")

    kernel = functools.partial(
        _norm_fused_kernel,
        grid_hw=grid_hw, m_total=m_total, eps=float(eps), cin=cin)

    out3 = pl.pallas_call(
        kernel,
        out_shape=jax.ShapeDtypeStruct((n, cout, hw), jnp.float32),
        grid_spec=pltpu.PrefetchScalarGridSpec(
            num_scalar_prefetch=0,
            grid=(2, n, grid_hw),
            in_specs=[
                # x: only needed in phase 0; in phase 1 pin to block (0,0,0) so
                # no fresh DMAs are issued.
                pl.BlockSpec((1, cin, tile_hw),
                             lambda p, s, j: ((1 - p) * s, 0, (1 - p) * j)),
                pl.BlockSpec((cout, cin), lambda p, s, j: (0, 0)),
                pl.BlockSpec((cout, 3), lambda p, s, j: (0, 0)),
            ],
            # phase 0: constant block index -> output buffer stays resident, no
            # writebacks; phase 1: one correct writeback per block.
            out_specs=pl.BlockSpec((1, cout, tile_hw),
                                   lambda p, s, j: (p * s, 0, p * j)),
            scratch_shapes=[
                pltpu.VMEM((total_tiles, cout, tile_hw), jnp.float32),  # y_buf
                pltpu.VMEM((cout, 1), jnp.float32),    # sum
                pltpu.VMEM((cout, 1), jnp.float32),    # sum of squares
                pltpu.VMEM((cout, 1), jnp.float32),    # scale = gamma*inv_std
                pltpu.VMEM((cout, 1), jnp.float32),    # shift = beta - mean*scale
            ],
        ),
        compiler_params=pltpu.CompilerParams(
            # Accumulator + VMEM-resident y couple all axes -> "arbitrary".
            dimension_semantics=("arbitrary", "arbitrary", "arbitrary")),
    )(x3, wt, params)

    return out3.reshape(n, cout, h, wdim)


# ----------------------------- reference ------------------------------------ #

def _reference(x_nchw, w, b, gamma, beta, eps=1e-5):
    """Pure-JAX reference (matches PyTorch Conv1x1 + BatchNorm2d(train) + ReLU)."""
    clean = x_nchw[: x_nchw.shape[0] // 3]
    n, cin, h, wdim = clean.shape
    xm = jnp.transpose(clean, (0, 2, 3, 1)).reshape(-1, cin)
    y = xm @ w + b
    mean = y.mean(axis=0, keepdims=True)
    var = ((y - mean) ** 2).mean(axis=0, keepdims=True)   # biased (training BN)
    out = gamma * (y - mean) / jnp.sqrt(var + eps) + beta
    out = jnp.maximum(out, 0.0)
    return out.reshape(n, h, wdim, -1).transpose(0, 3, 1, 2)


# ------------------------------ main ---------------------------------------- #

if __name__ == "__main__":
    key = jax.random.PRNGKey(0)
    k_x, k_w, k_b, k_g, k_be = jax.random.split(key, 5)

    N, CIN, H, W = 6, 4, 16, 16      # batch of 6 -> clean third has 2 samples
    COUT = 8

    x = jax.random.normal(k_x, (N, CIN, H, W), dtype=jnp.float32)
    w = jax.random.normal(k_w, (CIN, COUT), dtype=jnp.float32) * 0.1
    b = jax.random.normal(k_b, (COUT,), dtype=jnp.float32) * 0.1
    gamma = 1.0 + 0.1 * jax.random.normal(k_g, (COUT,), dtype=jnp.float32)
    beta = 0.1 * jax.random.normal(k_be, (COUT,), dtype=jnp.float32)

    out = norm_training_forward(x, w, b, gamma, beta)
    out = jax.block_until_ready(out)

    ref = _reference(x, w, b, gamma, beta)
    assert out.shape == (N // 3, COUT, H, W)
    assert jnp.allclose(out, ref, atol=1e-4, rtol=1e-4), float(
        jnp.max(jnp.abs(out - ref)))

    print("KERNEL_OK")
</pallas_src>

<mosaic_0001>
module attributes {stable_mosaic.version = 11 : i64} {
  func.func @_norm_fused_kernel(%arg0: i32, %arg1: i32, %arg2: i32, %arg3: memref<1x4x256xf32, #tpu.memory_space<vmem>>, %arg4: memref<8x4xf32, #tpu.memory_space<vmem>>, %arg5: memref<8x3xf32, #tpu.memory_space<vmem>>, %arg6: memref<1x8x256xf32, #tpu.memory_space<vmem>>, %arg7: memref<2x8x256xf32, #tpu.memory_space<vmem>>, %arg8: memref<8x1xf32, #tpu.memory_space<vmem>>, %arg9: memref<8x1xf32, #tpu.memory_space<vmem>>, %arg10: memref<8x1xf32, #tpu.memory_space<vmem>>, %arg11: memref<8x1xf32, #tpu.memory_space<vmem>>) attributes {dimension_semantics = [#tpu.dimension_semantics<arbitrary>, #tpu.dimension_semantics<arbitrary>, #tpu.dimension_semantics<arbitrary>], iteration_bounds = array<i64: 2, 2, 1>, scalar_prefetch = 0 : i64, scratch_operands = 5 : i64, tpu.core_type = #tpu.core_type<tc>, window_params = [{transform_indices = @transform_0, window_bounds = array<i64: 1, 4, 256>}, {pipeline_mode = #tpu.pipeline_mode<synchronous>, transform_indices = @transform_1, window_bounds = array<i64: 8, 4>}, {pipeline_mode = #tpu.pipeline_mode<synchronous>, transform_indices = @transform_2, window_bounds = array<i64: 8, 3>}, {transform_indices = @transform_3, window_bounds = array<i64: 1, 8, 256>}]} {
    %c1_i32 = arith.constant 1 : i32
    %0 = arith.muli %arg1, %c1_i32 : i32
    %1 = arith.addi %0, %arg2 : i32
    %c0_i32 = arith.constant 0 : i32
    %2 = arith.cmpi eq, %arg0, %c0_i32 : i32
    %c0_i32_0 = arith.constant 0 : i32
    %3 = arith.cmpi eq, %1, %c0_i32_0 : i32
    %4 = arith.andi %2, %3 : i1
    %5 = arith.extui %4 : i1 to i32
    %c0_i32_1 = arith.constant 0 : i32
    %6 = arith.cmpi ne, %5, %c0_i32_1 : i32
    scf.if %6 {
      %cst = arith.constant 0.000000e+00 : f32
      %18 = vector.broadcast %cst : f32 to vector<8x1xf32>
      %c0 = arith.constant 0 : index
      %c0_9 = arith.constant 0 : index
      %19 = vector.load %arg8[%c0, %c0_9] : memref<8x1xf32, #tpu.memory_space<vmem>>, vector<8x1xf32>
      tpu.vector_store %arg8[%c0, %c0_9], %18 {strides = array<i32>} : memref<8x1xf32, #tpu.memory_space<vmem>>, vector<8x1xf32>,
      %cst_10 = arith.constant 0.000000e+00 : f32
      %20 = vector.broadcast %cst_10 : f32 to vector<8x1xf32>
      %c0_11 = arith.constant 0 : index
      %c0_12 = arith.constant 0 : index
      %21 = vector.load %arg9[%c0_11, %c0_12] : memref<8x1xf32, #tpu.memory_space<vmem>>, vector<8x1xf32>
      tpu.vector_store %arg9[%c0_11, %c0_12], %20 {strides = array<i32>} : memref<8x1xf32, #tpu.memory_space<vmem>>, vector<8x1xf32>,
    } else {
    }
    %c0_i32_2 = arith.constant 0 : i32
    %7 = arith.cmpi eq, %arg0, %c0_i32_2 : i32
    %8 = arith.extui %7 : i1 to i32
    %c0_i32_3 = arith.constant 0 : i32
    %9 = arith.cmpi ne, %8, %c0_i32_3 : i32
    scf.if %9 {
      %c0 = arith.constant 0 : index
      %c0_9 = arith.constant 0 : index
      %c0_10 = arith.constant 0 : index
      %18 = vector.load %arg3[%c0, %c0_9, %c0_10] : memref<1x4x256xf32, #tpu.memory_space<vmem>>, vector<1x4x256xf32>
      %19 = vector.shape_cast %18 : vector<1x4x256xf32> to vector<4x256xf32>
      %c0_11 = arith.constant 0 : index
      %c0_12 = arith.constant 0 : index
      %20 = vector.load %arg4[%c0_11, %c0_12] : memref<8x4xf32, #tpu.memory_space<vmem>>, vector<8x4xf32>
      %c0_13 = arith.constant 0 : index
      %c0_14 = arith.constant 0 : index
      %21 = vector.load %arg5[%c0_13, %c0_14] : memref<8x3xf32, #tpu.memory_space<vmem>>, vector<8x3xf32>
      %22 = vector.extract_strided_slice %20 {offsets = [0, 0], sizes = [8, 1], strides = [1, 1]} : vector<8x4xf32> to vector<8x1xf32>
      %23 = vector.extract_strided_slice %19 {offsets = [0, 0], sizes = [1, 256], strides = [1, 1]} : vector<4x256xf32> to vector<1x256xf32>
      %24 = vector.broadcast %22 : vector<8x1xf32> to vector<8x256xf32>
      %25 = vector.broadcast %23 : vector<1x256xf32> to vector<8x256xf32>
      %26 = arith.mulf %24, %25 : vector<8x256xf32>
      %27 = vector.extract_strided_slice %20 {offsets = [0, 1], sizes = [8, 1], strides = [1, 1]} : vector<8x4xf32> to vector<8x1xf32>
      %28 = vector.extract_strided_slice %19 {offsets = [1, 0], sizes = [1, 256], strides = [1, 1]} : vector<4x256xf32> to vector<1x256xf32>
      %29 = vector.broadcast %27 : vector<8x1xf32> to vector<8x256xf32>
      %30 = vector.broadcast %28 : vector<1x256xf32> to vector<8x256xf32>
      %31 = arith.mulf %29, %30 : vector<8x256xf32>
      %32 = arith.addf %26, %31 : vector<8x256xf32>
      %33 = vector.extract_strided_slice %20 {offsets = [0, 2], sizes = [8, 1], strides = [1, 1]} : vector<8x4xf32> to vector<8x1xf32>
      %34 = vector.extract_strided_slice %19 {offsets = [2, 0], sizes = [1, 256], strides = [1, 1]} : vector<4x256xf32> to vector<1x256xf32>
      %35 = vector.broadcast %33 : vector<8x1xf32> to vector<8x256xf32>
      %36 = vector.broadcast %34 : vector<1x256xf32> to vector<8x256xf32>
      %37 = arith.mulf %35, %36 : vector<8x256xf32>
      %38 = arith.addf %32, %37 : vector<8x256xf32>
      %39 = vector.extract_strided_slice %20 {offsets = [0, 3], sizes = [8, 1], strides = [1, 1]} : vector<8x4xf32> to vector<8x1xf32>
      %40 = vector.extract_strided_slice %19 {offsets = [3, 0], sizes = [1, 256], strides = [1, 1]} : vector<4x256xf32> to vector<1x256xf32>
      %41 = vector.broadcast %39 : vector<8x1xf32> to vector<8x256xf32>
      %42 = vector.broadcast %40 : vector<1x256xf32> to vector<8x256xf32>
      %43 = arith.mulf %41, %42 : vector<8x256xf32>
      %44 = arith.addf %38, %43 : vector<8x256xf32>
      %45 = vector.extract_strided_slice %21 {offsets = [0, 0], sizes = [8, 1], strides = [1, 1]} : vector<8x3xf32> to vector<8x1xf32>
      %46 = vector.broadcast %45 : vector<8x1xf32> to vector<8x256xf32>
      %47 = arith.addf %44, %46 : vector<8x256xf32>
      %48 = arith.index_cast %1 : i32 to index
      %c0_15 = arith.constant 0 : index
      %c0_16 = arith.constant 0 : index
      %49 = vector.load %arg7[%48, %c0_15, %c0_16] : memref<2x8x256xf32, #tpu.memory_space<vmem>>, vector<1x8x256xf32>
      %50 = vector.shape_cast %49 : vector<1x8x256xf32> to vector<8x256xf32>
      %51 = vector.shape_cast %47 : vector<8x256xf32> to vector<1x8x256xf32>
      tpu.vector_store %arg7[%48, %c0_15, %c0_16], %51 {strides = array<i32>} : memref<2x8x256xf32, #tpu.memory_space<vmem>>, vector<1x8x256xf32>,
      %c0_17 = arith.constant 0 : index
      %c0_18 = arith.constant 0 : index
      %52 = vector.load %arg8[%c0_17, %c0_18] : memref<8x1xf32, #tpu.memory_space<vmem>>, vector<8x1xf32>
      %cst = arith.constant dense<0.000000e+00> : vector<8xf32>
      %53 = vector.multi_reduction <add>, %47, %cst [1] : vector<8x256xf32> to vector<8xf32>
      %54 = vector.shape_cast %53 : vector<8xf32> to vector<8x1xf32>
      %55 = arith.addf %52, %54 : vector<8x1xf32>
      %c0_19 = arith.constant 0 : index
      %c0_20 = arith.constant 0 : index
      %56 = vector.load %arg8[%c0_19, %c0_20] : memref<8x1xf32, #tpu.memory_space<vmem>>, vector<8x1xf32>
      tpu.vector_store %arg8[%c0_19, %c0_20], %55 {strides = array<i32>} : memref<8x1xf32, #tpu.memory_space<vmem>>, vector<8x1xf32>,
      %c0_21 = arith.constant 0 : index
      %c0_22 = arith.constant 0 : index
      %57 = vector.load %arg9[%c0_21, %c0_22] : memref<8x1xf32, #tpu.memory_space<vmem>>, vector<8x1xf32>
      %58 = arith.mulf %47, %47 : vector<8x256xf32>
      %cst_23 = arith.constant dense<0.000000e+00> : vector<8xf32>
      %59 = vector.multi_reduction <add>, %58, %cst_23 [1] : vector<8x256xf32> to vector<8xf32>
      %60 = vector.shape_cast %59 : vector<8xf32> to vector<8x1xf32>
      %61 = arith.addf %57, %60 : vector<8x1xf32>
      %c0_24 = arith.constant 0 : index
      %c0_25 = arith.constant 0 : index
      %62 = vector.load %arg9[%c0_24, %c0_25] : memref<8x1xf32, #tpu.memory_space<vmem>>, vector<8x1xf32>
      tpu.vector_store %arg9[%c0_24, %c0_25], %61 {strides = array<i32>} : memref<8x1xf32, #tpu.memory_space<vmem>>, vector<8x1xf32>,
    } else {
    }
    %c1_i32_4 = arith.constant 1 : i32
    %10 = arith.cmpi eq, %arg0, %c1_i32_4 : i32
    %c0_i32_5 = arith.constant 0 : i32
    %11 = arith.cmpi eq, %1, %c0_i32_5 : i32
    %12 = arith.andi %10, %11 : i1
    %13 = arith.extui %12 : i1 to i32
    %c0_i32_6 = arith.constant 0 : i32
    %14 = arith.cmpi ne, %13, %c0_i32_6 : i32
    scf.if %14 {
      %c0 = arith.constant 0 : index
      %c0_9 = arith.constant 0 : index
      %18 = vector.load %arg5[%c0, %c0_9] : memref<8x3xf32, #tpu.memory_space<vmem>>, vector<8x3xf32>
      %c0_10 = arith.constant 0 : index
      %c0_11 = arith.constant 0 : index
      %19 = vector.load %arg8[%c0_10, %c0_11] : memref<8x1xf32, #tpu.memory_space<vmem>>, vector<8x1xf32>
      %cst = arith.constant 0.001953125 : f32
      %20 = vector.broadcast %cst : f32 to vector<8x1xf32>
      %21 = arith.mulf %19, %20 : vector<8x1xf32>
      %c0_12 = arith.constant 0 : index
      %c0_13 = arith.constant 0 : index
      %22 = vector.load %arg9[%c0_12, %c0_13] : memref<8x1xf32, #tpu.memory_space<vmem>>, vector<8x1xf32>
      %cst_14 = arith.constant 0.001953125 : f32
      %23 = vector.broadcast %cst_14 : f32 to vector<8x1xf32>
      %24 = arith.mulf %22, %23 : vector<8x1xf32>
      %25 = arith.mulf %21, %21 : vector<8x1xf32>
      %26 = arith.subf %24, %25 : vector<8x1xf32>
      %cst_15 = arith.constant 0.000000e+00 : f32
      %27 = vector.broadcast %cst_15 : f32 to vector<8x1xf32>
      %28 = arith.maximumf %26, %27 : vector<8x1xf32>
      %cst_16 = arith.constant 9.99999974E-6 : f32
      %29 = vector.broadcast %cst_16 : f32 to vector<8x1xf32>
      %30 = arith.addf %28, %29 : vector<8x1xf32>
      %31 = math.rsqrt %30 : vector<8x1xf32>
      %32 = vector.extract_strided_slice %18 {offsets = [0, 1], sizes = [8, 1], strides = [1, 1]} : vector<8x3xf32> to vector<8x1xf32>
      %33 = arith.mulf %32, %31 : vector<8x1xf32>
      %c0_17 = arith.constant 0 : index
      %c0_18 = arith.constant 0 : index
      %34 = vector.load %arg10[%c0_17, %c0_18] : memref<8x1xf32, #tpu.memory_space<vmem>>, vector<8x1xf32>
      tpu.vector_store %arg10[%c0_17, %c0_18], %33 {strides = array<i32>} : memref<8x1xf32, #tpu.memory_space<vmem>>, vector<8x1xf32>,
      %35 = vector.extract_strided_slice %18 {offsets = [0, 2], sizes = [8, 1], strides = [1, 1]} : vector<8x3xf32> to vector<8x1xf32>
      %c0_19 = arith.constant 0 : index
      %c0_20 = arith.constant 0 : index
      %36 = vector.load %arg10[%c0_19, %c0_20] : memref<8x1xf32, #tpu.memory_space<vmem>>, vector<8x1xf32>
      %37 = arith.mulf %21, %36 : vector<8x1xf32>
      %38 = arith.subf %35, %37 : vector<8x1xf32>
      %c0_21 = arith.constant 0 : index
      %c0_22 = arith.constant 0 : index
      %39 = vector.load %arg11[%c0_21, %c0_22] : memref<8x1xf32, #tpu.memory_space<vmem>>, vector<8x1xf32>
      tpu.vector_store %arg11[%c0_21, %c0_22], %38 {strides = array<i32>} : memref<8x1xf32, #tpu.memory_space<vmem>>, vector<8x1xf32>,
    } else {
    }
    %c1_i32_7 = arith.constant 1 : i32
    %15 = arith.cmpi eq, %arg0, %c1_i32_7 : i32
    %16 = arith.extui %15 : i1 to i32
    %c0_i32_8 = arith.constant 0 : i32
    %17 = arith.cmpi ne, %16, %c0_i32_8 : i32
    scf.if %17 {
      %18 = arith.index_cast %1 : i32 to index
      %c0 = arith.constant 0 : index
      %c0_9 = arith.constant 0 : index
      %19 = vector.load %arg7[%18, %c0, %c0_9] : memref<2x8x256xf32, #tpu.memory_space<vmem>>, vector<1x8x256xf32>
      %20 = vector.shape_cast %19 : vector<1x8x256xf32> to vector<8x256xf32>
      %c0_10 = arith.constant 0 : index
      %c0_11 = arith.constant 0 : index
      %21 = vector.load %arg10[%c0_10, %c0_11] : memref<8x1xf32, #tpu.memory_space<vmem>>, vector<8x1xf32>
      %22 = vector.broadcast %21 : vector<8x1xf32> to vector<8x256xf32>
      %23 = arith.mulf %20, %22 : vector<8x256xf32>
      %c0_12 = arith.constant 0 : index
      %c0_13 = arith.constant 0 : index
      %24 = vector.load %arg11[%c0_12, %c0_13] : memref<8x1xf32, #tpu.memory_space<vmem>>, vector<8x1xf32>
      %25 = vector.broadcast %24 : vector<8x1xf32> to vector<8x256xf32>
      %26 = arith.addf %23, %25 : vector<8x256xf32>
      %cst = arith.constant 0.000000e+00 : f32
      %27 = vector.broadcast %cst : f32 to vector<8x256xf32>
      %28 = arith.maximumf %26, %27 : vector<8x256xf32>
      %c0_14 = arith.constant 0 : index
      %c0_15 = arith.constant 0 : index
      %c0_16 = arith.constant 0 : index
      %29 = vector.load %arg6[%c0_14, %c0_15, %c0_16] : memref<1x8x256xf32, #tpu.memory_space<vmem>>, vector<1x8x256xf32>
      %30 = vector.shape_cast %29 : vector<1x8x256xf32> to vector<8x256xf32>
      %31 = vector.shape_cast %28 : vector<8x256xf32> to vector<1x8x256xf32>
      tpu.vector_store %arg6[%c0_14, %c0_15, %c0_16], %31 {strides = array<i32>} : memref<1x8x256xf32, #tpu.memory_space<vmem>>, vector<1x8x256xf32>,
    } else {
    }
    return
  }
  func.func @transform_0(%arg0: i32, %arg1: i32, %arg2: i32) -> (i32, i32, i32) {
    %c1_i32 = arith.constant 1 : i32
    %0 = arith.subi %c1_i32, %arg0 : i32
    %1 = arith.muli %0, %arg1 : i32
    %c1_i32_0 = arith.constant 1 : i32
    %2 = arith.subi %c1_i32_0, %arg0 : i32
    %3 = arith.muli %2, %arg2 : i32
    %c0_i32 = arith.constant 0 : i32
    %c0_i32_1 = arith.constant 0 : i32
    return %1, %c0_i32, %3 : i32, i32, i32
  }
  func.func @transform_1(%arg0: i32, %arg1: i32, %arg2: i32) -> (i32, i32) {
    %c0_i32 = arith.constant 0 : i32
    %c0_i32_0 = arith.constant 0 : i32
    %c0_i32_1 = arith.constant 0 : i32
    return %c0_i32, %c0_i32_0 : i32, i32
  }
  func.func @transform_2(%arg0: i32, %arg1: i32, %arg2: i32) -> (i32, i32) {
    %c0_i32 = arith.constant 0 : i32
    %c0_i32_0 = arith.constant 0 : i32
    %c0_i32_1 = arith.constant 0 : i32
    return %c0_i32, %c0_i32_0 : i32, i32
  }
  func.func @transform_3(%arg0: i32, %arg1: i32, %arg2: i32) -> (i32, i32, i32) {
    %0 = arith.muli %arg0, %arg1 : i32
    %1 = arith.muli %arg0, %arg2 : i32
    %c0_i32 = arith.constant 0 : i32
    %c0_i32_0 = arith.constant 0 : i32
    return %0, %c0_i32, %1 : i32, i32, i32
  }
}

</mosaic_0001>

<bundles_post_ra>
// kernel: tpu_custom_call.1
= control target key start
LH: loop header
LB: loop body
LE: loop exit
PB: predicated region body
PF: predicated region fallthrough
CT: control target
= control target key end

     0   :  { %8 = vsyncpa [#allocation8], 0  ;;  %s954_s0 = inlined_call_operand.vmem [shape: f32[2,4,256], index: 0, kind: input, shape index: {}]   ;;  %s955_s1 = inlined_call_operand.vmem [shape: f32[8,4], index: 1, kind: input, shape index: {}]   ;;  %s956_s2 = inlined_call_operand.vmem [shape: f32[8,3], index: 2, kind: input, shape index: {}]   ;;  %s957_s3 = inlined_call_operand.hbm [shape: f32[2,8,256], index: 3, kind: output, shape index: {}]  }
   0x1   :  { %10 = vsyncpa [#allocation8 + $0x1], 0  ;;  %s794_s12 = smov 0   ;;  %s796_s13 = smov 0  }
   0x2   :  { %s798_s14 = smov 0   ;;  %s800_s15 = smov 0  }
   0x3   :  { %s802_s16 = smov 0   ;;  %s804_s17 = smov 0  }
   0x4   :  { %s806_s18 = smov 0   ;;  %s808_s19 = smov 0  }
   0x5 LB: > { %s554_s20 = sadd.s32 4294967295, %s761_s19   ;;  %s555_s21 = sadd.s32 4294967294, %s761_s19   ;;  %s761_s19 = sphi %s808_s19, %s16_s19   ;;  %s757_s18 = sphi %s806_s18, %s966_s18   ;;  %s753_s17 = sphi %s804_s17, %s965_s17   ;;  %s749_s16 = sphi %s802_s16, %s964_s16   ;;  %s745_s15 = sphi %s800_s15, %s963_s15   ;;  %s741_s14 = sphi %s798_s14, %s962_s14   ;;  %s737_s13 = sphi %s796_s13, %s961_s13   ;;  %s733_s12 = sphi %s794_s12, %s960_s12  }
   0x6   : > { %s31_s22 = sadd.s32 1, %s753_s17  ;;  %s35_s23 = sadd.s32 1, %s757_s18 }
   0x7   : > { %p33_p0 = scmp.ge.s32.totalorder %s31_s22, 2  ;;  %s115_s24 = smul.u32 %s753_s17, %s757_s18 }
   0x8   : > { %p134_p1 = scmp.ne.s32.totalorder %s741_s14, %s737_s13  ;;  %p135_p2 = scmp.eq.s32.totalorder %s554_s20, 3 }
   0x9   : > { %s968_s22 = smov (%p33_p0, %s31_s22), 0  ;;  %s970_s23 = smov (!%p33_p0, %s35_s23), %s757_s18 }
   0xa   : > { %p140_p3 = scmp.ne.s32.totalorder %s737_s13, %s733_s12  ;;  %p37_p4 = scmp.ge.s32.totalorder %s970_s23, 2 }
   0xb   : > { %p141_p5 = scmp.eq.s32.totalorder %s555_s21, 3  ;;  %p847_p6 = por %p135_p2, %p134_p1 }
   0xc   : > { %p558_p7 = scmp.ge.s32.totalorder %s761_s19, 1  ;;  %s972_s23 = smov (%p37_p4, %s970_s23), 0 }
   0xd   : > { %p854_p8 = por %p141_p5, %p140_p3  ;;  %p184_p9 = scmp.lt.s32.totalorder %s761_s19, 5 }
   0xe   : > { %s117_s27 = smul.u32 %s972_s23, %s968_s22  ;;  %s124_s29 = sadd.s32 1, %s741_s14 }
   0xf   : > { %p185_p10 = pnand %p558_p7, %p184_p9 }
  0x10   : > { %s119_s28 = ssub.s32 %s115_s24, %s117_s27  ;;  %s212_s4 = sand.u32 (!%p185_p10), 1, %s737_s13  }
  0x11   : > { %p122_p11 = scmp.eq.s32.totalorder %s119_s28, 0  ;;  %188 = sbr.rel (%p185_p10) target bundleno = 993 (0x3e1), region = 32 }
  0x12   : > { %s215_s5 = ssub.s32 (!%p185_p10), 1, %s749_s16  ;;  %s559_s6 = sshll.u32 (!%p185_p10), %s212_s4, 4 }
  0x13   : > { %s863_s30 = scalar_select %p122_p11, %s741_s14, %s124_s29  }
  0x14   : > { %s216_s7 = smul.u32 (!%p185_p10), %s745_s15, %s215_s5  ;;  %p235_p12 = scmp.eq.s32.totalorder (!%p185_p10), %s749_s16, 0 }
  0x15   : > { %p236_p0 = scmp.eq.s32.totalorder (!%p185_p10), %s745_s15, 0  ;;  %s879_s20 = scalar_lea.vmem (!%p185_p10), [#allocation7], %s559_s6 }
  0x16   : > { %p219_p13 = scmp.lt.s32.totalorder (!%p185_p10), %s216_s7, 1 }
  0x17   : > { %p237_p1 = pnand (!%p185_p10), %p236_p0, %p235_p12 }
  0x18   : > { %s974_s7 = smov (!%p219_p13, %s216_s7), 1  ;;  %vm241_vm0 = vcmask (!%p237_p1), 7168   ;;  %v763_v0 = vmov (!%p237_p1), 0.0  }
  0x19   : > { %s573_s8 = sshll.u32 %s974_s7, 3  ;;  %240 = sbr.rel (%p237_p1) target bundleno = 32 (0x20), region = 36  ;;  %242 = vst.msk [vmem:[#allocation3] sm:$0xff] (!%p237_p1), %vm241_vm0, %v763_v0  ;;  %243 = vst.msk [vmem:[#allocation4] sm:$0xff] (!%p237_p1), %vm241_vm0, %v763_v0 }
  0x1a   : > { %s877_s11 = scalar_lea.vmem %s954_s0, %s573_s8 }
  0x20 PF: > { %p562_p2 = scmp.ne.s32.totalorder %s749_s16, 0 }
  0x21   : > { %v248_v1 = vld [vmem:[%s955_s1] sm:$0xff] (!%p562_p2)  ;;  %v764_v2 = vmov (!%p562_p2), 0   ;;  %v765_v3 = vmov (!%p562_p2), 2   ;;  %v766_v4 = vmov (!%p562_p2), 1   ;;  %v767_v5 = vmov (!%p562_p2), 3   ;;  %s574_s29 = sshll.u32 (!%p562_p2), %s745_s15, 4 }
  0x22   : > { %246 = sbr.rel (%p562_p2) target bundleno = 327 (0x147), region = 40  ;;  %658 = vset.pattern.permute.xlu0 (!%p562_p2), %v764_v2  ;;  %660 = vset.pattern.permute.xlu1 (!%p562_p2), %v765_v3  ;;  %v249_v6 = vld [vmem:[%s956_s2] sm:$0xff] (!%p562_p2)  ;;  %v256_v7 = vlaneseq (!%p562_p2)  ;;  %s363_s5 = scalar_lea.vmem (!%p562_p2), [#allocation2], %s574_s29  ;;  %vm371_vm1 = vcmask (!%p562_p2), 7168   ;;  %v373_v61 = vld [vmem:[#allocation4] sm:$0xff] (!%p562_p2) }
  0x23   : > { %252 = vperm.xlu0 (!%p562_p2), %658, %v248_v1   ;;  %303 = vperm.xlu1 (!%p562_p2), %660, %v248_v1   ;;  %v247_v13 = vld [vmem:[%s877_s11] sm:$0xff] (!%p562_p2) }
  0x24   : > { %v257_v8 = vshrl.u32 (!%p562_p2), %v256_v7, 7  ;;  %v366_v59 = vld [vmem:[#allocation3] sm:$0xff] (!%p562_p2) }
  0x26   : > { %v258_v9 = vsub.s32 (!%p562_p2), 0, %v257_v8  ;;  %v262_v10 = vsub.s32 (!%p562_p2), 4, %v257_v8  ;;  %v282_v11 = vsub.s32 (!%p562_p2), 1, %v257_v8  ;;  %v286_v12 = vsub.s32 (!%p562_p2), 5, %v257_v8 }
  0x27   : > { %659 = vset.pattern.permute.xlu0 (!%p562_p2), %v766_v4  ;;  %661 = vset.pattern.permute.xlu1 (!%p562_p2), %v767_v5  ;;  %v308_v14 = vsub.s32 (!%p562_p2), 2, %v257_v8  ;;  %v312_v15 = vsub.s32 (!%p562_p2), 6, %v257_v8  ;;  %v334_v16 = vsub.s32 (!%p562_p2), 3, %v257_v8  ;;  %v338_v17 = vsub.s32 (!%p562_p2), 7, %v257_v8 }
  0x28   : > { %277 = vperm.xlu0 (!%p562_p2), %659, %v248_v1   ;;  %329 = vperm.xlu1 (!%p562_p2), %661, %v248_v1   ;;  %v259_v18 = vrot.slane (!%p562_p2), %v247_v13, %v258_v9  ;;  %v263_v19 = vrot.slane (!%p562_p2), %v247_v13, %v262_v10  ;;  %v283_v20 = vrot.slane (!%p562_p2), %v247_v13, %v282_v11 }
  0x29   : > { %v287_v21 = vrot.slane %v247_v13, %v286_v12  ;;  %v309_v22 = vrot.slane %v247_v13, %v308_v14  ;;  %v313_v23 = vrot.slane %v247_v13, %v312_v15  ;;  %v335_v26 = vrot.slane %v247_v13, %v334_v16 }
  0x2a   : > { %v339_v27 = vrot.slane %v247_v13, %v338_v17  ;;  %v269_v28 = vrot.slane %v259_v18, %v258_v9  ;;  %v273_v29 = vrot.slane %v263_v19, %v258_v9  ;;  %v293_v30 = vrot.slane %v283_v20, %v282_v11 }
  0x2b   : > { %v297_v31 = vrot.slane %v287_v21, %v282_v11  ;;  %v319_v32 = vrot.slane %v309_v22, %v308_v14  ;;  %v323_v33 = vrot.slane %v313_v23, %v308_v14  ;;  %v345_v34 = vrot.slane %v335_v26, %v334_v16 }
  0x2c   : > { %662 = vset.pattern.permute.xlu1 %v764_v2  ;;  %663 = vset.pattern.permute.xlu0 %v764_v2  ;;  %v349_v35 = vrot.slane %v339_v27, %v334_v16 }
  0x2d   : > { %356 = vperm.xlu1 %662, %v249_v6  }
  0xa2   : > { %v253_v24 = vpop.permute.xlu0 %252  ;;  %v304_v25 = vpop.permute.xlu1 %303 }
  0xa3   : > { %v274_v38 = vmul.f32 %v269_v28, %v253_v24  ;;  %v275_v39 = vmul.f32 %v273_v29, %v253_v24  ;;  %v324_v42 = vmul.f32 %v319_v32, %v304_v25  ;;  %v325_v43 = vmul.f32 %v323_v33, %v304_v25 }
  0xa7   : > { %v278_v36 = vpop.permute.xlu0 %277  ;;  %v330_v37 = vpop.permute.xlu1 %329 }
  0xa8   : > { %v298_v40 = vmul.f32 %v293_v30, %v278_v36  ;;  %v299_v41 = vmul.f32 %v297_v31, %v278_v36  ;;  %v350_v46 = vmul.f32 %v345_v34, %v330_v37  ;;  %v351_v47 = vmul.f32 %v349_v35, %v330_v37 }
  0xaa   : > { %v300_v44 = vadd.f32 %v298_v40, %v274_v38  ;;  %v301_v45 = vadd.f32 %v299_v41, %v275_v39 }
  0xac   : > { %v326_v48 = vadd.f32 %v324_v42, %v300_v44  ;;  %v327_v49 = vadd.f32 %v325_v43, %v301_v45  ;;  %v357_v50 = vpop.permute.xlu1 %356 }
  0xae   : > { %v352_v51 = vadd.f32 %v350_v46, %v326_v48  ;;  %v353_v52 = vadd.f32 %v351_v47, %v327_v49 }
  0xb0   : > { %v359_v53 = vadd.f32 %v357_v50, %v352_v51  ;;  %v360_v54 = vadd.f32 %v357_v50, %v353_v52 }
  0xb2   : > { %364 = vst [vmem:[%s363_s5] sm:$0xff] %v359_v53  ;;  %365 = vst [vmem:[%s363_s5 + $0x8] sm:$0xff] %v360_v54  ;;  %v367_v55 = vadd.f32 %v360_v54, %v359_v53  ;;  %v374_v56 = vmul.f32 %v359_v53, %v359_v53  ;;  %v375_v57 = vmul.f32 %v360_v54, %v360_v54 }
  0xb4   : > { %368 = vadd.xlane.f32.xlu0 %v367_v55  ;;  %v376_v58 = vadd.f32 %v375_v57, %v374_v56 }
  0xb6   : > { %377 = vadd.xlane.f32.xlu1 %v376_v58 }
 0x141   : > { %v369_v60 = vpop.xlane.xlu0 %368 }
 0x142   : > { %v370_v62 = vadd.f32 %v369_v60, %v366_v59 }
 0x143   : > { %v378_v63 = vpop.xlane.xlu1 %377 }
 0x144   : > { %372 = vst.msk [vmem:[#allocation3] sm:$0xff] %vm371_vm1, %v370_v62  ;;  %v379_v0 = vadd.f32 %v378_v63, %v373_v61 }
 0x146   : > { %380 = vst.msk [vmem:[#allocation4] sm:$0xff] %vm371_vm1, %v379_v0 }
 0x147 PF: > { %p381_p3 = scmp.eq.s32.totalorder %s749_s16, 1 }
 0x149   : > { %p382_p4 = pnand %p381_p3, %p236_p0 }
 0x14a   : > { %s768_s6 = smov (!%p382_p4), 1   ;;  %v386_v10 = vld [vmem:[%s956_s2] sm:$0xff] (!%p382_p4)  ;;  %s769_s9 = smov (!%p382_p4), 127   ;;  %vm405_vm2 = vcmask (!%p382_p4), 7168  }
 0x14b   : > { %385 = sbr.rel (%p382_p4) target bundleno = 828 (0x33c), region = 44  ;;  %v387_v1 = vld [vmem:[#allocation3] sm:$0xff] (!%p382_p4)  ;;  %s770_s10 = smov (!%p382_p4), 2  }
 0x14c   : > { %v388_v3 = vmul.f32 (!%p382_p4), 0.001953125, %v387_v1  ;;  %s771_s11 = smov (!%p382_p4), 126  }
 0x14d   : > { %v389_v2 = vld [vmem:[#allocation4] sm:$0xff] (!%p382_p4) }
 0x14e   : > { %v390_v4 = vmul.f32 (!%p382_p4), 0.001953125, %v389_v2  ;;  %v391_v5 = vmul.f32 (!%p382_p4), %v388_v3, %v388_v3 }
 0x150   : > { %v392_v6 = vsub.f32 (!%p382_p4), %v390_v4, %v391_v5 }
 0x152   : > { %v393_v7 = vmax.f32 %v392_v6, 0.0 }
 0x154   : > { %v394_v8 = vadd.f32 1e-05, %v393_v7 }
 0x156   : > { %664 = vrsqrt.f32 %v394_v8 }
 0x160   : > { %v665_v9 = vpop.eup %664 }
 0x161   : > { %397 = vrot.lane.b32.xlu0 %v665_v9, %s768_s6 }
 0x1d3   : > { %v398_v11 = vpop.permute.xlu0 %397 }
 0x1d4   : > { %v400_v12 = vmul.f32 %v398_v11, %v386_v10 }
 0x1d6   : > { %402 = vrot.lane.b32.xlu0 %v400_v12, %s769_s9 }
 0x248   : > { %v403_v13 = vpop.permute.xlu0 %402 }
 0x249   : > { %406 = vst.msk [vmem:[#allocation5] sm:$0xff] %vm405_vm2, %v403_v13 }
 0x250   : > { %v407_v14 = vld [vmem:[#allocation5] sm:$0xff] }
 0x251   : > { %v408_v15 = vmul.f32 %v407_v14, %v388_v3 }
 0x253   : > { %410 = vrot.lane.b32.xlu1 %v408_v15, %s770_s10 }
 0x2c5   : > { %v411_v16 = vpop.permute.xlu1 %410 }
 0x2c6   : > { %v413_v17 = vsub.f32 %v386_v10, %v411_v16 }
 0x2c8   : > { %415 = vrot.lane.b32.xlu1 %v413_v17, %s771_s11 }
 0x33a   : > { %v416_v18 = vpop.permute.xlu1 %415 }
 0x33b   : > { %418 = vst.msk [vmem:[#allocation6] sm:$0xff] %vm405_vm2, %v416_v18 }
 0x33c PF: > { %p565_p5 = scmp.ne.s32.totalorder %s749_s16, 1 }
 0x33d   : > { %v427_v19 = vld [vmem:[#allocation5] sm:$0xff] (!%p565_p5)  ;;  %v772_v20 = vmov (!%p565_p5), 0   ;;  %s575_s21 = sshll.u32 (!%p565_p5), %s745_s15, 4 }
 0x33e   : > { %421 = sbr.rel (%p565_p5) target bundleno = 968 (0x3c8), region = 48  ;;  %666 = vset.pattern.permute.xlu0 (!%p565_p5), %v772_v20  ;;  %s424_s24 = scalar_lea.vmem (!%p565_p5), [#allocation2], %s575_s21 }
 0x33f   : > { %430 = vperm.xlu0 (!%p565_p5), %666, %v427_v19   ;;  %v425_v23 = vld [vmem:[%s424_s24] sm:$0xff] (!%p565_p5)  ;;  %v426_v24 = vld [vmem:[%s424_s24 + $0x8] sm:$0xff] (!%p565_p5) }
 0x342   : > { %v435_v21 = vld [vmem:[#allocation6] sm:$0xff] (!%p565_p5) }
 0x343   : > { %438 = vperm.xlu0 (!%p565_p5), %666, %v435_v21  }
 0x3be   : > { %v431_v22 = vpop.permute.xlu0 %430 }
 0x3bf   : > { %v433_v25 = vmul.f32 %v431_v22, %v425_v23  ;;  %v434_v26 = vmul.f32 %v431_v22, %v426_v24 }
 0x3c2   : > { %v439_v27 = vpop.permute.xlu0 %438 }
 0x3c3   : > { %v441_v28 = vadd.f32 %v439_v27, %v433_v25  ;;  %v442_v29 = vadd.f32 %v439_v27, %v434_v26 }
 0x3c5   : > { %v443_v30 = vmax.f32 %v441_v28, 0.0  ;;  %v444_v31 = vmax.f32 %v442_v29, 0.0 }
 0x3c7   : > { %445 = vst [vmem:[%s879_s20] sm:$0xff] %v443_v30  ;;  %446 = vst [vmem:[%s879_s20 + $0x8] sm:$0xff] %v444_v31 }
 0x3c8 PF: > { %s455_s27 = smul.u32 %s745_s15, %s749_s16  ;;  %s466_s28 = sshll.u32 %s879_s20, 4  ;;  %s903_s28 = int_to_ptr.vmem [resolvable:$true] %s466_s28 }
 0x3c9   : > { %s448_s8 = scalar_lea.sflag [#allocation8], %s212_s4  ;;  %s667_s9 = scalar_lea.vmem %s903_s28, 256 }
 0x3ca   : > { %s576_s29 = sshll.u32 %s455_s27, 8  ;;  %p668_p7 = scmp.ne.s32.totalorder %s903_s28, %s667_s9 }
 0x3cb   : > { %s464_s7 = scalar_lea.hbm %s957_s3, %s576_s29  ;;  %s773_s10 = smov [#allocation7]  }
 0x3cc   : > { %p669_p9 = pnand %p668_p7, %p847_p6  ;;  %s671_s15 = sshll.u32 %s773_s10, 4  ;;  %s672_s15 = int_to_ptr.vmem [resolvable:$false] %s671_s15 }
 0x3cd   : > { %s673_s16 = scalar_lea.vmem %s672_s15, 512  ;;  %p674_p11 = scmp.lt.s32.totalorder %s903_s28, %s672_s15 }
 0x3ce   : > { %p670_p10 = pneg %p669_p9  ;;  %p675_p12 = scmp.lt.s32.totalorder %s673_s16, %s667_s9 }
 0x3d0   : > { %p676_p13 = por %p675_p12, %p674_p11 }
 0x3d2   : > { %p677_p0 = pnand %p676_p13, %p670_p10 }
 0x3d4   : > { %680 = shalt.err (!%p677_p0)
}
 0x3d5   : > { %s681_s20 = scalar_lea.hbm %s464_s7, 256  ;;  %s685_s21 = scalar_lea.hbm %s957_s3, 512 }
 0x3d6   : > { %p682_p1 = scmp.ne.s32.totalorder %s464_s7, %s681_s20  ;;  %p686_p4 = scmp.lt.u32.totalorder %s464_s7, %s957_s3 }
 0x3d7   : > { %p687_p5 = scmp.lt.u32.totalorder %s685_s21, %s681_s20  ;;  %p689_p9 = scmp.lt.u32.totalorder %s681_s20, %s464_s7 }
 0x3d8   : > { %p683_p2 = pnand %p682_p1, %p847_p6 }
 0x3d9   : > { %p688_p7 = por %p687_p5, %p686_p4 }
 0x3da   : > { %p684_p3 = pneg %p683_p2 }
 0x3db   : > { %p690_p11 = por %p689_p9, %p688_p7 }
 0x3dd   : > { %p691_p10 = pnand %p690_p11, %p684_p3 }
 0x3df   : > { %694 = shalt.err (!%p691_p10)
}
 0x3e0   : > { %577 = dma.vmem_to_hbm [thread:$0]  (%p847_p6), %s903_s28, 256, %s464_s7, %s448_s8  }
 0x3e1 PF: > { %p583_p12 = scmp.ge.s32.totalorder %s761_s19, 2  ;;  %s478_s29 = sand.u32 1, %s733_s12  }
 0x3e2   : > { %s479_s5 = scalar_lea.sflag [#allocation8], %s478_s29 }
 0x3e3   : > { %p580_p13 = pnand %p583_p12, %p854_p8 }
 0x3e5   : > { %728 = dma.done.wait (!%p580_p13), %s479_s5, 256  }
 0x3e6   : > { %730 = vsyncadd (!%p580_p13), %s479_s5, 4294967040  ;;  %s16_s19 = sadd.s32 1, %s761_s19   ;;  %s960_s12 = smov %s737_s13 }
 0x3e7   : > { %p13_p0 = scmp.ge.s32.totalorder %s16_s19, 6   ;;  %s961_s13 = smov %s741_s14 }
 0x3e8   : > { %s962_s14 = smov %s863_s30  ;;  %s963_s15 = smov %s753_s17 }
 0x3e9   : > { %s964_s16 = smov %s757_s18  ;;  %s965_s17 = smov %s968_s22 }
 0x3ea   : > { %s966_s18 = smov %s972_s23  ;;  %15 = sbr.rel (!%p13_p0) target bundleno = 5 (0x5), region = 85 }
 0x3f1   :  { %484 = vsyncpa [#allocation8], 1 }
 0x3f2   :  { %486 = vsyncpa [#allocation8 + $0x1], 1 }

</bundles_post_ra>
